<compile_context>
chip_gen: v7x
topology: tpu7x:2x2x1
jax: 0.10.0
libtpu: 0.0.40
codegen_flags: <defaults>
</compile_context>

<pallas_src>
import functools

import jax
import jax.numpy as jnp
from jax.experimental import pallas as pl
from jax.experimental.pallas import tpu as pltpu


def _mish_kernel(x_ref, o_ref, *, refine_recip: bool):
    x = x_ref[...].astype(jnp.float32)
    # mish(x) = x * tanh(softplus(x)) = x * u / (u + 2),
    #   u = t * (t + 2),  t = exp(x).
    # Clamp before exp so it never overflows; for x > 20,
    # tanh(softplus(x)) == 1 in f32, so the result is just x there.
    t = jnp.exp(jnp.minimum(x, 20.0))
    u = t * (t + 2.0)
    den = u + 2.0
    r = pl.reciprocal(den, approx=True)      # EUP slot, ~2^-12 rel. error
    if refine_recip:
        r = r * (2.0 - den * r)              # one Newton-Raphson step -> ~f32 exact
    y = jnp.where(x > 20.0, x, x * (u * r))
    o_ref[...] = y.astype(o_ref.dtype)


def _mish_jnp(x):
    """Plain-JAX Mish (stable softplus form) for tiny ragged tails."""
    xf = x.astype(jnp.float32)
    sp = jnp.maximum(xf, 0.0) + jnp.log1p(jnp.exp(-jnp.abs(xf)))
    return (xf * jnp.tanh(sp)).astype(x.dtype)


def _round_up(a: int, b: int) -> int:
    return ((a + b - 1) // b) * b


def _tensorcores_per_chip() -> int:
    try:
        kind = jax.devices()[0].device_kind.lower()
    except Exception:
        return 1
    # v7x has 2 TensorCores per chip; v4/v5p are megacore. v5e/v6e have 1.
    return 2 if any(tag in kind for tag in ("v7", "v5p", "v4")) else 1


def _pick_lanes(n: int, max_lanes: int) -> int:
    """Largest multiple-of-128 divisor of n that is <= max_lanes (requires n % 128 == 0)."""
    m = n // 128
    for d in range(max(1, min(m, max_lanes // 128)), 0, -1):
        if m % d == 0:
            return 128 * d
    return 128


def _mish_lane_dense(flat, lanes, *, target_block_bytes=4 * 1024 * 1024):
    """Run the kernel over a flat array whose size is an exact multiple of `lanes`."""
    n = flat.shape[0]
    dtype = flat.dtype
    itemsize = jnp.dtype(dtype).itemsize
    sub = max(8, 32 // itemsize)          # sublane granularity: f32->8, bf16->16, int8->32
    rows = n // lanes
    x2d = flat.reshape(rows, lanes)
    n_tc = _tensorcores_per_chip()

    full_bytes = rows * lanes * itemsize
    if rows <= sub or (n_tc == 1 and full_bytes <= target_block_bytes):
        # Whole array in one block (no pointless grid-step overhead on 1-TC chips).
        tr = rows
    else:
        # ~target_block_bytes per block, a multiple of the sublane granularity.
        tr = max(sub, min(target_block_bytes // (lanes * itemsize), rows) // sub * sub)

    grid_n = pl.cdiv(rows, tr)

    # Balance the grid across TensorCores ("parallel" shards grid steps).
    if n_tc > 1:
        if grid_n < n_tc and rows >= n_tc * sub:
            tr = max(sub, _round_up(pl.cdiv(rows, n_tc), sub))
            grid_n = pl.cdiv(rows, tr)
        elif grid_n > n_tc and grid_n % n_tc != 0:
            tr = max(sub, _round_up(pl.cdiv(rows, _round_up(grid_n, n_tc)), sub))
            grid_n = pl.cdiv(rows, tr)

    refine = itemsize > 2                 # exact-ish reciprocal for 32-bit outputs
    kernel = functools.partial(_mish_kernel, refine_recip=refine)
    cost = pl.CostEstimate(
        flops=8 * n,
        transcendentals=2 * n,
        bytes_accessed=2 * n * itemsize,
    )

    out2d = pl.pallas_call(
        kernel,
        out_shape=jax.ShapeDtypeStruct((rows, lanes), dtype),
        grid_spec=pltpu.PrefetchScalarGridSpec(
            num_scalar_prefetch=0,
            grid=(grid_n,),
            in_specs=[pl.BlockSpec((tr, lanes), lambda i: (i, 0))],
            out_specs=pl.BlockSpec((tr, lanes), lambda i: (i, 0)),
        ),
        compiler_params=pltpu.CompilerParams(
            dimension_semantics=("parallel",),
            vmem_limit_bytes=32 * 1024 * 1024,
        ),
        cost_estimate=cost,
    )(x2d)
    return out2d.reshape(-1)


def mish(x: jax.Array, *, max_lanes: int = 2048,
         target_block_bytes: int = 4 * 1024 * 1024) -> jax.Array:
    """Elementwise Mish over an arbitrarily-shaped array (e.g. NCHW)."""
    orig_shape = x.shape
    n = x.size
    if n == 0:
        return x
    flat = x.reshape(-1)                  # free (row-major bitcast) in XLA

    if n % 128 == 0:
        lanes = _pick_lanes(n, max_lanes)
        out = _mish_lane_dense(flat, lanes, target_block_bytes=target_block_bytes)
        return out.reshape(orig_shape)

    # Ragged size: kernel on the lane-aligned prefix, plain jnp on the tiny
    # (< max_lanes element) tail.  Avoids the full-array pad + slice (two
    # extra HBM passes) of the previous version; only the concat remains.
    n_main = (n // max_lanes) * max_lanes
    if n_main == 0:
        # TODO(synk): sub-2048-element ragged inputs skip the kernel entirely.
        return _mish_jnp(flat).reshape(orig_shape)
    main = _mish_lane_dense(flat[:n_main], max_lanes,
                            target_block_bytes=target_block_bytes)
    tail = _mish_jnp(flat[n_main:])
    return jnp.concatenate([main, tail]).reshape(orig_shape)


def mish_ref(x: jax.Array) -> jax.Array:
    xf = x.astype(jnp.float32)
    return (xf * jnp.tanh(jax.nn.softplus(xf))).astype(x.dtype)


if __name__ == "__main__":
    key = jax.random.PRNGKey(0)
    x = jax.random.normal(key, (2, 4, 16, 16), dtype=jnp.float32) * 3.0

    # f32 path (rational form + NR-refined reciprocal)
    y = mish(x)
    jax.block_until_ready(y)
    y_ref = mish_ref(x)
    assert y.shape == x.shape and y.dtype == x.dtype
    assert jnp.allclose(y, y_ref, atol=1e-5, rtol=1e-5), "f32 mismatch vs reference"

    # bf16 path (rational form, approx reciprocal; f32 math inside the kernel)
    xb = x.astype(jnp.bfloat16)
    yb = mish(xb)
    jax.block_until_ready(yb)
    yb_ref = mish_ref(xb)
    assert yb.shape == xb.shape and yb.dtype == xb.dtype
    assert jnp.allclose(
        yb.astype(jnp.float32), yb_ref.astype(jnp.float32), atol=1e-2, rtol=2e-2
    ), "bf16 mismatch vs reference"

    print("KERNEL_OK")
</pallas_src>

<mosaic_0001>
module attributes {stable_mosaic.version = 11 : i64} {
  func.func @_mish_kernel(%arg0: i32, %arg1: memref<1x2048xf32, #tpu.memory_space<vmem>>, %arg2: memref<1x2048xf32, #tpu.memory_space<vmem>>) attributes {dimension_semantics = [#tpu.dimension_semantics<parallel>], iteration_bounds = array<i64: 1>, scalar_prefetch = 0 : i64, scratch_operands = 0 : i64, tpu.core_type = #tpu.core_type<tc>, window_params = [{transform_indices = @transform_0, window_bounds = array<i64: 1, 2048>}, {transform_indices = @transform_1, window_bounds = array<i64: 1, 2048>}]} {
    %c0 = arith.constant 0 : index
    %c0_0 = arith.constant 0 : index
    %0 = vector.load %arg1[%c0, %c0_0] : memref<1x2048xf32, #tpu.memory_space<vmem>>, vector<1x2048xf32>
    %cst = arith.constant 2.000000e+01 : f32
    %1 = vector.broadcast %cst : f32 to vector<1x2048xf32>
    %2 = arith.minimumf %0, %1 : vector<1x2048xf32>
    %3 = math.exp %2 : vector<1x2048xf32>
    %cst_1 = arith.constant 2.000000e+00 : f32
    %4 = vector.broadcast %cst_1 : f32 to vector<1x2048xf32>
    %5 = arith.addf %3, %4 : vector<1x2048xf32>
    %6 = arith.mulf %3, %5 : vector<1x2048xf32>
    %cst_2 = arith.constant 2.000000e+00 : f32
    %7 = vector.broadcast %cst_2 : f32 to vector<1x2048xf32>
    %8 = arith.addf %6, %7 : vector<1x2048xf32>
    %9 = tpu.reciprocal %8 {approx = true} : vector<1x2048xf32> -> vector<1x2048xf32>
    %10 = arith.mulf %8, %9 : vector<1x2048xf32>
    %cst_3 = arith.constant 2.000000e+00 : f32
    %11 = vector.broadcast %cst_3 : f32 to vector<1x2048xf32>
    %12 = arith.subf %11, %10 : vector<1x2048xf32>
    %13 = arith.mulf %9, %12 : vector<1x2048xf32>
    %cst_4 = arith.constant 2.000000e+01 : f32
    %14 = vector.broadcast %cst_4 : f32 to vector<1x2048xf32>
    %15 = arith.cmpf ogt, %0, %14 : vector<1x2048xf32>
    %16 = arith.mulf %6, %13 : vector<1x2048xf32>
    %17 = arith.mulf %0, %16 : vector<1x2048xf32>
    %18 = arith.select %15, %0, %17 : vector<1x2048xi1>, vector<1x2048xf32>
    %c0_5 = arith.constant 0 : index
    %c0_6 = arith.constant 0 : index
    %19 = vector.load %arg2[%c0_5, %c0_6] : memref<1x2048xf32, #tpu.memory_space<vmem>>, vector<1x2048xf32>
    tpu.vector_store %arg2[%c0_5, %c0_6], %18 {strides = array<i32>} : memref<1x2048xf32, #tpu.memory_space<vmem>>, vector<1x2048xf32>,
    return
  }
  func.func @transform_0(%arg0: i32) -> (i32, i32) {
    %c0_i32 = arith.constant 0 : i32
    %c0_i32_0 = arith.constant 0 : i32
    return %arg0, %c0_i32 : i32, i32
  }
  func.func @transform_1(%arg0: i32) -> (i32, i32) {
    %c0_i32 = arith.constant 0 : i32
    %c0_i32_0 = arith.constant 0 : i32
    return %arg0, %c0_i32 : i32, i32
  }
}

</mosaic_0001>

<bundles_post_ra>
// kernel: tpu_custom_call.1
= control target key start
LH: loop header
LB: loop body
LE: loop exit
PB: predicated region body
PF: predicated region fallthrough
CT: control target
= control target key end

     0   :  { %6 = vsyncpa [#allocation3], 0  ;;  %s162_s0 = inlined_call_operand.hbm [shape: f32[1,2048], index: 0, kind: input, shape index: {}]   ;;  %s163_s1 = inlined_call_operand.hbm [shape: f32[1,2048], index: 1, kind: output, shape index: {}]  }
   0x1   :  { %7 = vsyncpa [#allocation4], 0  ;;  %s126_s6 = smov [#allocation2]   ;;  %s78_s10 = scalar_lea.hbm %s162_s0, 256 }
   0x2   :  { %s14_s7 = sshll.u32 %s126_s6, 4  ;;  %p79_p0 = scmp.ne.s32.totalorder %s162_s0, %s78_s10  ;;  %s15_s7 = int_to_ptr.vmem [resolvable:$true] %s14_s7 }
   0x3   :  { %p82_p1 = scmp.lt.u32.totalorder %s78_s10, %s162_s0 }
   0x5   :  { %p84_p2 = pnand %p82_p1, %p79_p0 }
   0x7   :  { %87 = shalt.err (!%p84_p2)
}
   0x8   :  { %s88_s15 = scalar_lea.vmem %s15_s7, 256  ;;  %p93_p4 = scmp.lt.s32.totalorder %s15_s7, %s15_s7 }
   0x9   :  { %p89_p3 = scmp.ne.s32.totalorder %s15_s7, %s88_s15  ;;  %p94_p5 = scmp.lt.s32.totalorder %s88_s15, %s88_s15 }
   0xb   :  { %p95_p6 = por %p94_p5, %p93_p4 }
   0xd   :  { %p96_p7 = pnand %p95_p6, %p89_p3 }
   0xf   :  { %99 = shalt.err (!%p96_p7)
}
  0x10   :  { %17 = dma.hbm_to_vmem [thread:$0]  %s162_s0, 256, %s15_s7, [#allocation3]  }
  0x11   :  { %122 = dma.done.wait [#allocation3], 256  }
  0x12   :  { %123 = vsyncadd [#allocation3], 4294967040  ;;  %v21_v0 = vld [vmem:[#allocation2] sm:$0xff]  ;;  %v22_v1 = vld [vmem:[#allocation2 + $0x8] sm:$0xff]  ;;  %s127_s0 = smov [#allocation5]  }
  0x13   :  { %v23_v2 = vmin.f32 %v21_v0, 20.0  ;;  %v24_v3 = vmin.f32 %v22_v1, 20.0  ;;  %vm43_vm0 = vcmp.gt.f32.partialorder %v21_v0, 20.0  ;;  %s59_s18 = sshll.u32 %s127_s0, 4  ;;  %vm44_vm1 = vcmp.gt.f32.partialorder %v22_v1, 20.0  ;;  %s60_s18 = int_to_ptr.vmem [resolvable:$true] %s59_s18 }
  0x14   :  { %s100_s19 = scalar_lea.vmem %s60_s18, 256  ;;  %p105_p9 = scmp.lt.s32.totalorder %s60_s18, %s60_s18 }
  0x15   :  { %v25_v4 = vmul.f32 1.442695, %v23_v2  ;;  %v27_v5 = vmul.f32 1.442695, %v24_v3  ;;  %p101_p8 = scmp.ne.s32.totalorder %s60_s18, %s100_s19  ;;  %p106_p10 = scmp.lt.s32.totalorder %s100_s19, %s100_s19 }
  0x17   :  { %70 = vpow2.f32 %v25_v4  ;;  %p107_p11 = por %p106_p10, %p105_p9 }
  0x18   :  { %72 = vpow2.f32 %v27_v5 }
  0x19   :  { %p108_p12 = pnand %p107_p11, %p101_p8 }
  0x21   :  { %v71_v6 = vpop.eup %70 }
  0x22   :  { %v73_v7 = vpop.eup %72  ;;  %v29_v8 = vadd.f32 2.0, %v71_v6 }
  0x23   :  { %v30_v9 = vadd.f32 2.0, %v73_v7 }
  0x24   :  { %v31_v10 = vmul.f32 %v71_v6, %v29_v8 }
  0x25   :  { %v32_v11 = vmul.f32 %v73_v7, %v30_v9 }
  0x26   :  { %v33_v12 = vadd.f32 2.0, %v31_v10 }
  0x27   :  { %v34_v13 = vadd.f32 2.0, %v32_v11 }
  0x28   :  { %74 = vrcp.f32 %v33_v12 }
  0x29   :  { %76 = vrcp.f32 %v34_v13 }
  0x32   :  { %v75_v14 = vpop.eup %74 }
  0x33   :  { %v77_v15 = vpop.eup %76  ;;  %v37_v16 = vmul.f32 %v75_v14, %v33_v12 }
  0x34   :  { %v38_v17 = vmul.f32 %v77_v15, %v34_v13 }
  0x35   :  { %v39_v18 = vsub.f32 2.0, %v37_v16 }
  0x36   :  { %v40_v19 = vsub.f32 2.0, %v38_v17 }
  0x37   :  { %v41_v20 = vmul.f32 %v75_v14, %v39_v18 }
  0x38   :  { %v42_v21 = vmul.f32 %v77_v15, %v40_v19 }
  0x39   :  { %v45_v22 = vmul.f32 %v41_v20, %v31_v10 }
  0x3a   :  { %v46_v23 = vmul.f32 %v42_v21, %v32_v11 }
  0x3b   :  { %v47_v24 = vmul.f32 %v45_v22, %v21_v0 }
  0x3c   :  { %v48_v25 = vmul.f32 %v46_v23, %v22_v1 }
  0x3d   :  { %v49_v26 = vsel %vm43_vm0, %v21_v0, %v47_v24 }
  0x3e   :  { %51 = vst [vmem:[#allocation5] sm:$0xff] %v49_v26  ;;  %v50_v27 = vsel %vm44_vm1, %v22_v1, %v48_v25 }
  0x3f   :  { %52 = vst [vmem:[#allocation5 + $0x8] sm:$0xff] %v50_v27 }
  0x40   :  { %111 = shalt.err (!%p108_p12)
}
  0x41   :  { %s112_s22 = scalar_lea.hbm %s163_s1, 256 }
  0x42   :  { %p113_p13 = scmp.ne.s32.totalorder %s163_s1, %s112_s22  ;;  %p116_p0 = scmp.lt.u32.totalorder %s112_s22, %s163_s1 }
  0x44   :  { %p118_p1 = pnand %p116_p0, %p113_p13 }
  0x46   :  { %121 = shalt.err (!%p118_p1)
}
  0x47   :  { %62 = dma.vmem_to_hbm [thread:$0]  %s60_s18, 256, %s163_s1, [#allocation4]  }
  0x48   :  { %124 = dma.done.wait [#allocation4], 256  }
  0x49   :  { %125 = vsyncadd [#allocation4], 4294967040 }
  0x4a   :  { %66 = vsyncpa [#allocation3], 1 }
  0x4b   :  { %67 = vsyncpa [#allocation4], 1 }

</bundles_post_ra>
